<compile_context>
chip_gen: v7x
topology: tpu7x:2x2x1
jax: 0.10.0
libtpu: 0.0.40
codegen_flags: <defaults>
</compile_context>

<pallas_src>
import jax
import jax.numpy as jnp
from jax.experimental import pallas as pl
from jax.experimental.pallas import tpu as pltpu

# ---------------- configuration (small, consistent with a molecule graph) ----
N = 64          # number of nodes
E = 256         # number of (directed) random edges; self-loops added separately
IN_DIM = 32     # input node-feature width
OUT_DIM = 128   # GCNConv output width (lane-dense output slab)


# ---------------- Pallas kernel ----------------
def gcn_kernel(adj_ref, x_ref, w_ref, b_ref, out_ref):
    # Aggregate first (cheaper: N*N*IN + N*IN*OUT flops vs. N*IN*OUT + N*N*OUT).
    agg = jnp.dot(adj_ref[...], x_ref[...],
                  preferred_element_type=jnp.float32)          # (N, IN_DIM)
    h = jnp.dot(agg, w_ref[...],
                preferred_element_type=jnp.float32) + b_ref[...]  # (N, OUT_DIM)
    # activate_func = ReLU ; nn.Dropout is an eval-mode identity.
    out_ref[...] = jnp.maximum(h, 0.0).astype(out_ref.dtype)


# ---------------- wrapper ----------------
def gnn_forward(x, adj_norm, w, b):
    vspec = lambda: pl.BlockSpec(memory_space=pltpu.MemorySpace.VMEM)
    return pl.pallas_call(
        gcn_kernel,
        out_shape=jax.ShapeDtypeStruct((N, OUT_DIM), jnp.float32),
        in_specs=[vspec() for _ in range(4)],
        out_specs=vspec(),
    )(adj_norm, x, w, b)


# ---------------- one-time dense normalized adjacency (wrapper-side) --------
def build_norm_adj(edge_index, n):
    """D^{-1/2} (A + I) D^{-1/2} with A[dst, src] accumulated per edge."""
    src, dst = edge_index
    loop = jnp.arange(n, dtype=src.dtype)
    src = jnp.concatenate([src, loop])
    dst = jnp.concatenate([dst, loop])
    A = jnp.zeros((n, n), jnp.float32).at[dst, src].add(1.0)   # rows = dst
    deg = A.sum(axis=1)                                        # in-degree incl. self-loop
    dinv = jnp.where(deg > 0, deg ** -0.5, 0.0)
    return dinv[:, None] * A * dinv[None, :]


# ---------------- plain-JAX reference (torch_geometric GCNConv semantics) ---
def gnn_ref(x, edge_index, w, b):
    n = x.shape[0]
    src, dst = edge_index
    loop = jnp.arange(n, dtype=src.dtype)
    src = jnp.concatenate([src, loop])
    dst = jnp.concatenate([dst, loop])
    ones = jnp.ones(src.shape[0], jnp.float32)
    deg = jax.ops.segment_sum(ones, dst, num_segments=n)
    dinv = jnp.where(deg > 0, deg ** -0.5, 0.0)
    norm = dinv[src] * dinv[dst]
    h = x @ w                                                  # lin(x) first (torch order)
    agg = jax.ops.segment_sum(h[src] * norm[:, None], dst, num_segments=n)
    out = jax.nn.relu(agg + b)                                 # activate_func
    return out                                                 # dropout = eval identity


if __name__ == "__main__":
    key = jax.random.PRNGKey(0)
    kx, ke, kw, kb = jax.random.split(key, 4)

    # deterministic synthetic graph + parameters
    x = jax.random.normal(kx, (N, IN_DIM), jnp.float32)          # data.x
    edge_index = jax.random.randint(ke, (2, E), 0, N)            # data.edge_index
    w = jax.random.uniform(kw, (IN_DIM, OUT_DIM), jnp.float32, -0.1, 0.1)
    b = jax.random.uniform(kb, (1, OUT_DIM), jnp.float32, -0.1, 0.1)

    adj_norm = build_norm_adj(edge_index, N)                     # one-time packing

    out = gnn_forward(x, adj_norm, w, b)
    jax.block_until_ready(out)

    ref = gnn_ref(x, edge_index, w, b)
    assert out.shape == (N, OUT_DIM)
    assert jnp.allclose(out, ref, atol=1e-5, rtol=1e-5), "GCNConv output mismatch"
    print("KERNEL_OK")
</pallas_src>

<mosaic_0001>
module attributes {stable_mosaic.version = 11 : i64} {
  func.func @gcn_kernel(%arg0: memref<64x64xf32, #tpu.memory_space<vmem>>, %arg1: memref<64x32xf32, #tpu.memory_space<vmem>>, %arg2: memref<32x128xf32, #tpu.memory_space<vmem>>, %arg3: memref<1x128xf32, #tpu.memory_space<vmem>>, %arg4: memref<64x128xf32, #tpu.memory_space<vmem>>) attributes {dimension_semantics = [], scalar_prefetch = 0 : i64, scratch_operands = 0 : i64, tpu.core_type = #tpu.core_type<tc>} {
    %c0 = arith.constant 0 : index
    %c0_0 = arith.constant 0 : index
    %0 = vector.load %arg0[%c0, %c0_0] : memref<64x64xf32, #tpu.memory_space<vmem>>, vector<64x64xf32>
    %c0_1 = arith.constant 0 : index
    %c0_2 = arith.constant 0 : index
    %1 = vector.load %arg1[%c0_1, %c0_2] : memref<64x32xf32, #tpu.memory_space<vmem>>, vector<64x32xf32>
    %cst = arith.constant dense<0.000000e+00> : vector<64x32xf32>
    %2 = tpu.matmul %0, %1, %cst {dimension_numbers = #tpu.dot_dimension_numbers<[1], [0], [0], [1], [0, 0, 1, 1], [], []>} : vector<64x64xf32>, vector<64x32xf32>, vector<64x32xf32> -> vector<64x32xf32>
    %c0_3 = arith.constant 0 : index
    %c0_4 = arith.constant 0 : index
    %3 = vector.load %arg2[%c0_3, %c0_4] : memref<32x128xf32, #tpu.memory_space<vmem>>, vector<32x128xf32>
    %cst_5 = arith.constant dense<0.000000e+00> : vector<64x128xf32>
    %4 = tpu.matmul %2, %3, %cst_5 {dimension_numbers = #tpu.dot_dimension_numbers<[1], [0], [0], [1], [0, 0, 1, 1], [], []>} : vector<64x32xf32>, vector<32x128xf32>, vector<64x128xf32> -> vector<64x128xf32>
    %c0_6 = arith.constant 0 : index
    %c0_7 = arith.constant 0 : index
    %5 = vector.load %arg3[%c0_6, %c0_7] : memref<1x128xf32, #tpu.memory_space<vmem>>, vector<1x128xf32>
    %6 = vector.broadcast %5 : vector<1x128xf32> to vector<64x128xf32>
    %7 = arith.addf %4, %6 : vector<64x128xf32>
    %cst_8 = arith.constant 0.000000e+00 : f32
    %8 = vector.broadcast %cst_8 : f32 to vector<64x128xf32>
    %9 = arith.maximumf %7, %8 : vector<64x128xf32>
    %c0_9 = arith.constant 0 : index
    %c0_10 = arith.constant 0 : index
    %10 = vector.load %arg4[%c0_9, %c0_10] : memref<64x128xf32, #tpu.memory_space<vmem>>, vector<64x128xf32>
    tpu.vector_store %arg4[%c0_9, %c0_10], %9 {strides = array<i32>} : memref<64x128xf32, #tpu.memory_space<vmem>>, vector<64x128xf32>,
    return
  }
}

</mosaic_0001>

<bundles_post_ra>
// kernel: tpu_custom_call.1
= control target key start
LH: loop header
LB: loop body
LE: loop exit
PB: predicated region body
PF: predicated region fallthrough
CT: control target
= control target key end

     0   :  { %vm34_vm0 = vcmask 523264   ;;  %s600_s0 = inlined_call_operand.vmem [shape: f32[64,64], index: 0, kind: input, shape index: {}]   ;;  %s601_s1 = inlined_call_operand.vmem [shape: f32[64,32], index: 1, kind: input, shape index: {}]   ;;  %s602_s2 = inlined_call_operand.vmem [shape: f32[32,128], index: 2, kind: input, shape index: {}]   ;;  %s603_s3 = inlined_call_operand.vmem [shape: f32[1,128], index: 3, kind: input, shape index: {}]   ;;  %s604_s4 = inlined_call_operand.hbm [shape: f32[64,128], index: 4, kind: output, shape index: {}]  }
   0x1   :  { %v26_v0 = vld [vmem:[%s601_s1] sm:$0xff]  ;;  %v27_v1 = vld [vmem:[%s601_s1 + $0x8] sm:$0xff]  ;;  %v28_v2 = vld [vmem:[%s601_s1 + $0x10] sm:$0xff] }
   0x2   :  { %v430_v3 = vpack.c.bf16 %v27_v1, %v26_v0  ;;  %v29_v4 = vld [vmem:[%s601_s1 + $0x18] sm:$0xff]  ;;  %v30_v6 = vld [vmem:[%s601_s1 + $0x20] sm:$0xff]  ;;  %v31_v7 = vld [vmem:[%s601_s1 + $0x28] sm:$0xff] }
   0x3   :  { %v434_v5 = vpack.c.bf16 %v29_v4, %v28_v2  ;;  %v18_v8 = vld [vmem:[%s600_s0] sm:$0xff]  ;;  %v32_v9 = vld [vmem:[%s601_s1 + $0x30] sm:$0xff]  ;;  %v438_v10 = vpack.c.bf16 %v31_v7, %v30_v6  ;;  %v33_v11 = vld [vmem:[%s601_s1 + $0x38] sm:$0xff] }
   0x4   :  { %431 = vmatprep.subr.bf16.mxu0 %v430_v3  ;;  %398 = vmatprep.mubr.msk.f32.mxu0 %vm34_vm0, %v18_v8  ;;  %v164_v12 = vld [vmem:[%s602_s2] sm:$0xff]  ;;  %v165_v13 = vld [vmem:[%s602_s2 + $0x8] sm:$0xff]  ;;  %v166_v15 = vld [vmem:[%s602_s2 + $0x10] sm:$0xff] }
   0x5   :  { %433 = vmatpush3.bf16.msra.mxu0 %v430_v3  ;;  %v446_v14 = vpack.c.bf16 %v165_v13, %v164_v12  ;;  %v167_v16 = vld [vmem:[%s602_s2 + $0x18] sm:$0xff] }
   0x6   :  { %435 = vmatprep.subr.bf16.mxu0 %v434_v5 }
   0x7   :  { %9 = vsyncpa [#allocation3], 0  ;;  %v450_v17 = vpack.c.bf16 %v167_v16, %v166_v15  ;;  %447 = vmatprep.subr.bf16.mxu1 %v446_v14  ;;  %v442_v18 = vpack.c.bf16 %v33_v11, %v32_v9  ;;  %v19_v19 = vld [vmem:[%s600_s0 + $0x8] sm:$0xff]  ;;  %v20_v20 = vld [vmem:[%s600_s0 + $0x10] sm:$0xff]  ;;  %vm175_vm1 = vcmask 261120  }
   0x8   :  { %449 = vmatpush3.bf16.msra.mxu1 %v446_v14  ;;  %v21_v21 = vld [vmem:[%s600_s0 + $0x18] sm:$0xff]  ;;  %v22_v22 = vld [vmem:[%s600_s0 + $0x20] sm:$0xff]  ;;  %v23_v23 = vld [vmem:[%s600_s0 + $0x28] sm:$0xff] }
   0x9   :  { %437 = vmatpush3.bf16.msra.mxu0 %v434_v5  ;;  %451 = vmatprep.subr.bf16.mxu1 %v450_v17  ;;  %v24_v24 = vld [vmem:[%s600_s0 + $0x30] sm:$0xff]  ;;  %v25_v25 = vld [vmem:[%s600_s0 + $0x38] sm:$0xff]  ;;  %v345_v34 = vld [vmem:[%s603_s3] ss:$0 sm:$0xff]  ;;  %s481_s3 = smov [#allocation2]  }
   0xa   :  { %439 = vmatprep.subr.bf16.mxu0 %v438_v10  ;;  %s326_s28 = sshll.u32 %s481_s3, 4  ;;  %s327_s28 = int_to_ptr.vmem [resolvable:$true] %s326_s28 }
   0xb   :  { %s457_s29 = scalar_lea.vmem %s327_s28, 1024  ;;  %p462_p1 = scmp.lt.s32.totalorder %s327_s28, %s327_s28 }
   0xc   :  { %453 = vmatpush3.bf16.msra.mxu1 %v450_v17  ;;  %p458_p0 = scmp.ne.s32.totalorder %s327_s28, %s457_s29  ;;  %p463_p2 = scmp.lt.s32.totalorder %s457_s29, %s457_s29 }
   0xd   :  { %441 = vmatpush3.bf16.msra.mxu0 %v438_v10 }
   0xe   :  { %443 = vmatprep.subr.bf16.mxu0 %v442_v18  ;;  %p464_p3 = por %p463_p2, %p462_p1 }
  0x10   :  { %p465_p4 = pnand %p464_p3, %p458_p0 }
  0x11   :  { %445 = vmatpush3.bf16.msra.mxu0 %v442_v18 }
  0x14   :  { %399 = vmatmul.mubr.msk.f32.vlgmr.msra.gmra.mrb[0].mxu0 %vm34_vm0, %v19_v19 }
  0x15   :  { %401 = vmatprep.mubr.msk.f32.mxu0 %vm34_vm0, %v20_v20 }
  0x18   :  { %402 = vmatmul.mubr.msk.f32.gmra.mrb[2].mxu0 %vm34_vm0, %v21_v21 }
  0x19   :  { %404 = vmatprep.mubr.msk.f32.mxu0 %vm34_vm0, %v22_v22 }
  0x1c   :  { %405 = vmatmul.mubr.msk.f32.gmra.mrb[4].mxu0 %vm34_vm0, %v23_v23 }
  0x1d   :  { %407 = vmatprep.mubr.msk.f32.mxu0 %vm34_vm0, %v24_v24 }
  0x20   :  { %408 = vmatmul.mubr.msk.f32.gmra.mrb[6].mxu0 %vm34_vm0, %v25_v25 }
  0xe7   :  { %v400_v26 = vpop.f32.mrb[0].mxu0 }
  0xe8   :  { %v125_v27 = vpop.f32.mrb[1].mxu0 }
  0xe9   :  { %418 = vmatprep.mubr.msk.f32.mxu1 %vm175_vm1, %v125_v27 }
  0xea   :  { %419 = vmatmul.mubr.msk.f32.vlgmr.msra.gmra.mrb[0].mxu1 %vm175_vm1, %v400_v26 }
  0xeb   :  { %v403_v28 = vpop.f32.mrb[2].mxu0 }
  0xec   :  { %v135_v29 = vpop.f32.mrb[3].mxu0 }
  0xed   :  { %421 = vmatprep.mubr.msk.f32.mxu1 %vm175_vm1, %v135_v29 }
  0xee   :  { %422 = vmatmul.mubr.msk.f32.gmra.mrb[2].mxu1 %vm175_vm1, %v403_v28 }
  0xef   :  { %v406_v30 = vpop.f32.mrb[4].mxu0 }
  0xf0   :  { %v145_v31 = vpop.f32.mrb[5].mxu0 }
  0xf1   :  { %424 = vmatprep.mubr.msk.f32.mxu1 %vm175_vm1, %v145_v31 }
  0xf2   :  { %425 = vmatmul.mubr.msk.f32.gmra.mrb[4].mxu1 %vm175_vm1, %v406_v30 }
  0xf3   :  { %v409_v32 = vpop.f32.mrb[6].mxu0 }
  0xf4   :  { %v155_v33 = vpop.f32.mrb[7].mxu0 }
  0xf5   :  { %427 = vmatprep.mubr.msk.f32.mxu1 %vm175_vm1, %v155_v33 }
  0xf6   :  { %428 = vmatmul.mubr.msk.f32.gmra.mrb[6].mxu1 %vm175_vm1, %v409_v32 }
 0x1bd   :  { %v420_v35 = vpop.f32.mrb[0].mxu1 }
 0x1be   :  { %v272_v36 = vadd.f32 %v420_v35, %v345_v34  ;;  %v266_v37 = vpop.f32.mrb[1].mxu1 }
 0x1bf   :  { %v267_v38 = vadd.f32 %v345_v34, %v266_v37 }
 0x1c0   :  { %v306_v39 = vmax.f32 %v272_v36, 0.0 }
 0x1c1   :  { %v305_v40 = vmax.f32 %v267_v38, 0.0  ;;  %v423_v41 = vpop.f32.mrb[2].mxu1 }
 0x1c2   :  { %314 = vst [vmem:[#allocation2 + $0x8] sm:$0xff] %v306_v39  ;;  %v282_v42 = vadd.f32 %v423_v41, %v345_v34  ;;  %v276_v43 = vpop.f32.mrb[3].mxu1 }
 0x1c3   :  { %313 = vst [vmem:[#allocation2] sm:$0xff] %v305_v40  ;;  %v277_v44 = vadd.f32 %v345_v34, %v276_v43 }
 0x1c4   :  { %v308_v45 = vmax.f32 %v282_v42, 0.0 }
 0x1c5   :  { %v307_v46 = vmax.f32 %v277_v44, 0.0  ;;  %v426_v47 = vpop.f32.mrb[4].mxu1 }
 0x1c6   :  { %316 = vst [vmem:[#allocation2 + $0x18] sm:$0xff] %v308_v45  ;;  %v292_v48 = vadd.f32 %v426_v47, %v345_v34  ;;  %v286_v49 = vpop.f32.mrb[5].mxu1 }
 0x1c7   :  { %315 = vst [vmem:[#allocation2 + $0x10] sm:$0xff] %v307_v46  ;;  %v287_v50 = vadd.f32 %v345_v34, %v286_v49 }
 0x1c8   :  { %v310_v51 = vmax.f32 %v292_v48, 0.0 }
 0x1c9   :  { %v309_v52 = vmax.f32 %v287_v50, 0.0  ;;  %v429_v53 = vpop.f32.mrb[6].mxu1 }
 0x1ca   :  { %318 = vst [vmem:[#allocation2 + $0x28] sm:$0xff] %v310_v51  ;;  %v302_v54 = vadd.f32 %v429_v53, %v345_v34  ;;  %v296_v55 = vpop.f32.mrb[7].mxu1 }
 0x1cb   :  { %317 = vst [vmem:[#allocation2 + $0x20] sm:$0xff] %v309_v52  ;;  %v297_v56 = vadd.f32 %v345_v34, %v296_v55 }
 0x1cc   :  { %v312_v57 = vmax.f32 %v302_v54, 0.0 }
 0x1cd   :  { %v311_v58 = vmax.f32 %v297_v56, 0.0 }
 0x1ce   :  { %320 = vst [vmem:[#allocation2 + $0x38] sm:$0xff] %v312_v57 }
 0x1cf   :  { %319 = vst [vmem:[#allocation2 + $0x30] sm:$0xff] %v311_v58 }
 0x1d0   :  { %468 = shalt.err (!%p465_p4)
}
 0x1d1   :  { %s469_s6 = scalar_lea.hbm %s604_s4, 1024 }
 0x1d2   :  { %p470_p5 = scmp.ne.s32.totalorder %s604_s4, %s469_s6  ;;  %p473_p6 = scmp.lt.u32.totalorder %s469_s6, %s604_s4 }
 0x1d4   :  { %p475_p7 = pnand %p473_p6, %p470_p5 }
 0x1d6   :  { %478 = shalt.err (!%p475_p7)
}
 0x1d7   :  { %s482_s11 = smov 128   ;;  %s483_s12 = smov 8  }
 0x1d8   :  { %332 = dma.vmem_to_hbm [thread:$0]  %s327_s28, 1024, %s604_s4, [#allocation3], %s482_s11, %s482_s11, %s483_s12  }
 0x1d9   :  { %479 = dma.done.wait [#allocation3], 1024  }
 0x1da   :  { %480 = vsyncadd [#allocation3], 4294966272 }
 0x1db   :  { %336 = vsyncpa [#allocation3], 1 }

</bundles_post_ra>
